<compile_context>
chip_gen: v5e
topology: v5e:2x2
jax: 0.10.0
libtpu: 0.0.40
codegen_flags: <defaults>
</compile_context>

<pallas_src>
import jax
import jax.numpy as jnp
from jax.experimental import pallas as pl
from jax.experimental.pallas import tpu as pltpu


# -------------------------------------------------------------------------
# Static shape configuration (implied by Linear(192, 128) in the fusion MLP:
# each conv encoder must flatten to 32 features -> 4x4 spatial inputs).
# -------------------------------------------------------------------------
RGB_SHAPE = (3, 4, 4)
DEPTH_SHAPE = (1, 4, 4)
D_RGB = 3 * 4 * 4        # 48
D_DEPTH = 1 * 4 * 4      # 16
D_IN = D_RGB + D_DEPTH + 6 + 6   # 76 packed input features
D_IN_PAD = 128           # lane-pad packed input
D_HID = 192              # stage-1 width (64+64+32+32) == stage-2 width (32+32+64+64)
N_OUT = 3
N_OUT_PAD = 128          # lane-pad final store (unmasked vst), slice outside


# -------------------------------------------------------------------------
# Fused kernel: 6 chained matmul+bias(+ReLU) stages, all operands in VMEM.
# -------------------------------------------------------------------------
def _fused_forward_kernel(x_ref,
                          w1_ref, b1_ref, w2_ref, b2_ref, w3_ref, b3_ref,
                          w4_ref, b4_ref, w5_ref, b5_ref, w6_ref, b6_ref,
                          o_ref):
    def dense(x, w_ref, b_ref, relu=True):
        y = jnp.dot(x, w_ref[...], preferred_element_type=jnp.float32)
        y = y + b_ref[...]
        if relu:
            y = jnp.maximum(y, 0.0)
        return y

    h = dense(x_ref[...], w1_ref, b1_ref)   # branch encoders, layer 1 (block-diag)
    h = dense(h, w2_ref, b2_ref)            # branch encoders, layer 2 -> "combined"
    h = dense(h, w3_ref, b3_ref)            # fusion Linear(192,128) + ReLU
    h = dense(h, w4_ref, b4_ref)            # fusion Linear(128,64)  + ReLU
    h = dense(h, w5_ref, b5_ref)            # decoder Linear(64,32)  + ReLU
    o_ref[...] = dense(h, w6_ref, b6_ref, relu=False)   # decoder Linear(32,3), lane-padded


# -------------------------------------------------------------------------
# Init-time parameter folding (plain XLA, runs once).
# -------------------------------------------------------------------------
def _conv3x3_s2_p1_as_dense(w_oihw, b, in_shape):
    """Fold Conv2d(k=3,s=2,p=1) on a fixed (C,H,W) input into an equivalent
    dense map on the NCHW-flattened activation.
    Returns (C*H*W, Cout*OH*OW) weight and (Cout*OH*OW,) bias."""
    C, H, W = in_shape
    n = C * H * W
    basis = jnp.eye(n, dtype=jnp.float32).reshape(n, C, H, W)
    out = jax.lax.conv_general_dilated(
        basis, w_oihw.astype(jnp.float32), window_strides=(2, 2),
        padding=((1, 1), (1, 1)),
        dimension_numbers=("NCHW", "OIHW", "NCHW"))
    _, cout, oh, ow = out.shape
    return out.reshape(n, cout * oh * ow), jnp.repeat(b.astype(jnp.float32), oh * ow)


def _block_diag(*mats):
    rows = sum(m.shape[0] for m in mats)
    cols = sum(m.shape[1] for m in mats)
    out = jnp.zeros((rows, cols), jnp.float32)
    r = c = 0
    for m in mats:
        out = out.at[r:r + m.shape[0], c:c + m.shape[1]].set(m)
        r += m.shape[0]
        c += m.shape[1]
    return out


def init_torch_like_params(key):
    """Synthetic deterministic params in PyTorch layout:
    conv (Cout,Cin,3,3)/(Cout,), linear (out,in)/(out,)."""
    ks = jax.random.split(key, 12)

    def lin(k, fin, fout):
        kw, kb = jax.random.split(k)
        w = jax.random.normal(kw, (fout, fin), jnp.float32) / jnp.sqrt(float(fin))
        b = 0.01 * jax.random.normal(kb, (fout,), jnp.float32)
        return w, b

    def conv(k, cin, cout):
        kw, kb = jax.random.split(k)
        w = jax.random.normal(kw, (cout, cin, 3, 3), jnp.float32) / jnp.sqrt(float(cin * 9))
        b = 0.01 * jax.random.normal(kb, (cout,), jnp.float32)
        return w, b

    return {
        "rgb_conv1": conv(ks[0], 3, 16), "rgb_conv2": conv(ks[1], 16, 32),
        "depth_conv1": conv(ks[2], 1, 16), "depth_conv2": conv(ks[3], 16, 32),
        "ft1": lin(ks[4], 6, 32), "ft2": lin(ks[5], 32, 64),
        "ee1": lin(ks[6], 6, 32), "ee2": lin(ks[7], 32, 64),
        "fusion1": lin(ks[8], 192, 128), "fusion2": lin(ks[9], 128, 64),
        "dec1": lin(ks[10], 64, 32), "dec2": lin(ks[11], 32, 3),
    }


def prepare_fused_params(p):
    """Build the 6 fused weight matrices (and (1,N) f32 biases) once at init."""
    rc1_w, rc1_b = _conv3x3_s2_p1_as_dense(*p["rgb_conv1"], RGB_SHAPE)     # (48, 64)
    rc2_w, rc2_b = _conv3x3_s2_p1_as_dense(*p["rgb_conv2"], (16, 2, 2))    # (64, 32)
    dc1_w, dc1_b = _conv3x3_s2_p1_as_dense(*p["depth_conv1"], DEPTH_SHAPE) # (16, 64)
    dc2_w, dc2_b = _conv3x3_s2_p1_as_dense(*p["depth_conv2"], (16, 2, 2))  # (64, 32)

    def lin_t(wb):
        w, b = wb
        return w.T.astype(jnp.float32), b.astype(jnp.float32)  # -> (in, out)

    ft1_w, ft1_b = lin_t(p["ft1"]); ft2_w, ft2_b = lin_t(p["ft2"])
    ee1_w, ee1_b = lin_t(p["ee1"]); ee2_w, ee2_b = lin_t(p["ee2"])
    fu1_w, fu1_b = lin_t(p["fusion1"]); fu2_w, fu2_b = lin_t(p["fusion2"])
    de1_w, de1_b = lin_t(p["dec1"]); de2_w, de2_b = lin_t(p["dec2"])

    # Stage 1: all four branch first-layers as one block-diagonal GEMM.
    w1 = _block_diag(rc1_w, dc1_w, ft1_w, ee1_w)               # (76, 192)
    w1 = jnp.pad(w1, ((0, D_IN_PAD - D_IN), (0, 0)))           # (128, 192)
    b1 = jnp.concatenate([rc1_b, dc1_b, ft1_b, ee1_b])         # (192,)

    # Stage 2: branch second-layers; output order matches torch.cat order.
    w2 = _block_diag(rc2_w, dc2_w, ft2_w, ee2_w)               # (192, 192)
    b2 = jnp.concatenate([rc2_b, dc2_b, ft2_b, ee2_b])         # (192,)

    # Final layer lane-padded so the only HBM store is unmasked.
    w6 = jnp.pad(de2_w, ((0, 0), (0, N_OUT_PAD - N_OUT)))      # (32, 128)
    b6 = jnp.pad(de2_b, (0, N_OUT_PAD - N_OUT))                # (128,)

    def row(b):
        return b.reshape(1, -1).astype(jnp.float32)

    return (w1, row(b1), w2, row(b2),
            fu1_w, row(fu1_b), fu2_w, row(fu2_b),
            de1_w, row(de1_b), w6, row(b6))


# -------------------------------------------------------------------------
# Forward pass (mirrors MultimodalNetwork.forward)
# -------------------------------------------------------------------------
@jax.jit
def multimodal_forward(fused_params, rgb, depth, ft_readings, ee_pose):
    B = rgb.shape[0]
    m_pad = ((B + 7) // 8) * 8  # sublane-align rows

    # Pack all modality inputs into one lane-padded (m_pad, 128) slab.
    x0 = jnp.concatenate(
        [rgb.reshape(B, -1), depth.reshape(B, -1), ft_readings, ee_pose], axis=1)
    x0 = jnp.pad(x0.astype(jnp.float32),
                 ((0, m_pad - B), (0, D_IN_PAD - x0.shape[1])))

    vmem_spec = pl.BlockSpec(memory_space=pltpu.MemorySpace.VMEM)
    out = pl.pallas_call(
        _fused_forward_kernel,
        out_shape=jax.ShapeDtypeStruct((m_pad, N_OUT_PAD), jnp.float32),
        in_specs=[vmem_spec] * 13,
        out_specs=vmem_spec,
    )(x0, *fused_params)
    return out[:B, :N_OUT]


# -------------------------------------------------------------------------
# Pure-JAX reference of the original PyTorch module (for a sanity check).
# -------------------------------------------------------------------------
def _reference_forward(p, rgb, depth, ft, ee):
    def conv_relu(x, w, b):
        y = jax.lax.conv_general_dilated(
            x, w, window_strides=(2, 2), padding=((1, 1), (1, 1)),
            dimension_numbers=("NCHW", "OIHW", "NCHW"))
        return jax.nn.relu(y + b[None, :, None, None])

    def lin(x, wb, relu=True):
        w, b = wb
        y = x @ w.T + b
        return jax.nn.relu(y) if relu else y

    r = conv_relu(rgb, *p["rgb_conv1"]); r = conv_relu(r, *p["rgb_conv2"])
    d = conv_relu(depth, *p["depth_conv1"]); d = conv_relu(d, *p["depth_conv2"])
    f = lin(lin(ft, p["ft1"]), p["ft2"])
    e = lin(lin(ee, p["ee1"]), p["ee2"])
    comb = jnp.concatenate(
        [r.reshape(r.shape[0], -1), d.reshape(d.shape[0], -1), f, e], axis=1)
    h = lin(lin(comb, p["fusion1"]), p["fusion2"])
    return lin(lin(h, p["dec1"]), p["dec2"], relu=False)


if __name__ == "__main__":
    key = jax.random.PRNGKey(0)
    k_rgb, k_depth, k_ft, k_ee, k_params = jax.random.split(key, 5)

    B = 2
    rgb = jax.random.normal(k_rgb, (B,) + RGB_SHAPE, jnp.float32)
    depth = jax.random.normal(k_depth, (B,) + DEPTH_SHAPE, jnp.float32)
    ft_readings = jax.random.normal(k_ft, (B, 6), jnp.float32)
    ee_pose = jax.random.normal(k_ee, (B, 6), jnp.float32)

    torch_params = init_torch_like_params(k_params)
    fused_params = prepare_fused_params(torch_params)   # built once, reused every call

    out = multimodal_forward(fused_params, rgb, depth, ft_readings, ee_pose)
    out = jax.block_until_ready(out)
    assert out.shape == (B, 3), out.shape
    assert bool(jnp.all(jnp.isfinite(out)))

    # Loose tolerance: MXU f32 matmul default precision differs slightly from
    # the XLA conv/dot reference path; a real bug would produce O(1) errors.
    ref = _reference_forward(torch_params, rgb, depth, ft_readings, ee_pose)
    assert jnp.allclose(out, ref, atol=1e-1, rtol=1e-1), (
        "max abs err", float(jnp.max(jnp.abs(out - ref))))

    print("KERNEL_OK")
</pallas_src>

<mosaic_0001>
module attributes {stable_mosaic.version = 11 : i64} {
  func.func @_fused_forward_kernel(%arg0: memref<8x128xf32, #tpu.memory_space<vmem>>, %arg1: memref<128x192xf32, #tpu.memory_space<vmem>>, %arg2: memref<1x192xf32, #tpu.memory_space<vmem>>, %arg3: memref<192x192xf32, #tpu.memory_space<vmem>>, %arg4: memref<1x192xf32, #tpu.memory_space<vmem>>, %arg5: memref<192x128xf32, #tpu.memory_space<vmem>>, %arg6: memref<1x128xf32, #tpu.memory_space<vmem>>, %arg7: memref<128x64xf32, #tpu.memory_space<vmem>>, %arg8: memref<1x64xf32, #tpu.memory_space<vmem>>, %arg9: memref<64x32xf32, #tpu.memory_space<vmem>>, %arg10: memref<1x32xf32, #tpu.memory_space<vmem>>, %arg11: memref<32x128xf32, #tpu.memory_space<vmem>>, %arg12: memref<1x128xf32, #tpu.memory_space<vmem>>, %arg13: memref<8x128xf32, #tpu.memory_space<vmem>>) attributes {dimension_semantics = [], scalar_prefetch = 0 : i64, scratch_operands = 0 : i64, tpu.core_type = #tpu.core_type<tc>} {
    %c0 = arith.constant 0 : index
    %c0_0 = arith.constant 0 : index
    %0 = vector.load %arg0[%c0, %c0_0] : memref<8x128xf32, #tpu.memory_space<vmem>>, vector<8x128xf32>
    %c0_1 = arith.constant 0 : index
    %c0_2 = arith.constant 0 : index
    %1 = vector.load %arg1[%c0_1, %c0_2] : memref<128x192xf32, #tpu.memory_space<vmem>>, vector<128x192xf32>
    %cst = arith.constant dense<0.000000e+00> : vector<8x192xf32>
    %2 = tpu.matmul %0, %1, %cst {dimension_numbers = #tpu.dot_dimension_numbers<[1], [0], [0], [1], [0, 0, 1, 1], [], []>} : vector<8x128xf32>, vector<128x192xf32>, vector<8x192xf32> -> vector<8x192xf32>
    %c0_3 = arith.constant 0 : index
    %c0_4 = arith.constant 0 : index
    %3 = vector.load %arg2[%c0_3, %c0_4] : memref<1x192xf32, #tpu.memory_space<vmem>>, vector<1x192xf32>
    %4 = vector.broadcast %3 : vector<1x192xf32> to vector<8x192xf32>
    %5 = arith.addf %2, %4 : vector<8x192xf32>
    %cst_5 = arith.constant 0.000000e+00 : f32
    %6 = vector.broadcast %cst_5 : f32 to vector<8x192xf32>
    %7 = arith.maximumf %5, %6 : vector<8x192xf32>
    %c0_6 = arith.constant 0 : index
    %c0_7 = arith.constant 0 : index
    %8 = vector.load %arg3[%c0_6, %c0_7] : memref<192x192xf32, #tpu.memory_space<vmem>>, vector<192x192xf32>
    %cst_8 = arith.constant dense<0.000000e+00> : vector<8x192xf32>
    %9 = tpu.matmul %7, %8, %cst_8 {dimension_numbers = #tpu.dot_dimension_numbers<[1], [0], [0], [1], [0, 0, 1, 1], [], []>} : vector<8x192xf32>, vector<192x192xf32>, vector<8x192xf32> -> vector<8x192xf32>
    %c0_9 = arith.constant 0 : index
    %c0_10 = arith.constant 0 : index
    %10 = vector.load %arg4[%c0_9, %c0_10] : memref<1x192xf32, #tpu.memory_space<vmem>>, vector<1x192xf32>
    %11 = vector.broadcast %10 : vector<1x192xf32> to vector<8x192xf32>
    %12 = arith.addf %9, %11 : vector<8x192xf32>
    %cst_11 = arith.constant 0.000000e+00 : f32
    %13 = vector.broadcast %cst_11 : f32 to vector<8x192xf32>
    %14 = arith.maximumf %12, %13 : vector<8x192xf32>
    %c0_12 = arith.constant 0 : index
    %c0_13 = arith.constant 0 : index
    %15 = vector.load %arg5[%c0_12, %c0_13] : memref<192x128xf32, #tpu.memory_space<vmem>>, vector<192x128xf32>
    %cst_14 = arith.constant dense<0.000000e+00> : vector<8x128xf32>
    %16 = tpu.matmul %14, %15, %cst_14 {dimension_numbers = #tpu.dot_dimension_numbers<[1], [0], [0], [1], [0, 0, 1, 1], [], []>} : vector<8x192xf32>, vector<192x128xf32>, vector<8x128xf32> -> vector<8x128xf32>
    %c0_15 = arith.constant 0 : index
    %c0_16 = arith.constant 0 : index
    %17 = vector.load %arg6[%c0_15, %c0_16] : memref<1x128xf32, #tpu.memory_space<vmem>>, vector<1x128xf32>
    %18 = vector.broadcast %17 : vector<1x128xf32> to vector<8x128xf32>
    %19 = arith.addf %16, %18 : vector<8x128xf32>
    %cst_17 = arith.constant 0.000000e+00 : f32
    %20 = vector.broadcast %cst_17 : f32 to vector<8x128xf32>
    %21 = arith.maximumf %19, %20 : vector<8x128xf32>
    %c0_18 = arith.constant 0 : index
    %c0_19 = arith.constant 0 : index
    %22 = vector.load %arg7[%c0_18, %c0_19] : memref<128x64xf32, #tpu.memory_space<vmem>>, vector<128x64xf32>
    %cst_20 = arith.constant dense<0.000000e+00> : vector<8x64xf32>
    %23 = tpu.matmul %21, %22, %cst_20 {dimension_numbers = #tpu.dot_dimension_numbers<[1], [0], [0], [1], [0, 0, 1, 1], [], []>} : vector<8x128xf32>, vector<128x64xf32>, vector<8x64xf32> -> vector<8x64xf32>
    %c0_21 = arith.constant 0 : index
    %c0_22 = arith.constant 0 : index
    %24 = vector.load %arg8[%c0_21, %c0_22] : memref<1x64xf32, #tpu.memory_space<vmem>>, vector<1x64xf32>
    %25 = vector.broadcast %24 : vector<1x64xf32> to vector<8x64xf32>
    %26 = arith.addf %23, %25 : vector<8x64xf32>
    %cst_23 = arith.constant 0.000000e+00 : f32
    %27 = vector.broadcast %cst_23 : f32 to vector<8x64xf32>
    %28 = arith.maximumf %26, %27 : vector<8x64xf32>
    %c0_24 = arith.constant 0 : index
    %c0_25 = arith.constant 0 : index
    %29 = vector.load %arg9[%c0_24, %c0_25] : memref<64x32xf32, #tpu.memory_space<vmem>>, vector<64x32xf32>
    %cst_26 = arith.constant dense<0.000000e+00> : vector<8x32xf32>
    %30 = tpu.matmul %28, %29, %cst_26 {dimension_numbers = #tpu.dot_dimension_numbers<[1], [0], [0], [1], [0, 0, 1, 1], [], []>} : vector<8x64xf32>, vector<64x32xf32>, vector<8x32xf32> -> vector<8x32xf32>
    %c0_27 = arith.constant 0 : index
    %c0_28 = arith.constant 0 : index
    %31 = vector.load %arg10[%c0_27, %c0_28] : memref<1x32xf32, #tpu.memory_space<vmem>>, vector<1x32xf32>
    %32 = vector.broadcast %31 : vector<1x32xf32> to vector<8x32xf32>
    %33 = arith.addf %30, %32 : vector<8x32xf32>
    %cst_29 = arith.constant 0.000000e+00 : f32
    %34 = vector.broadcast %cst_29 : f32 to vector<8x32xf32>
    %35 = arith.maximumf %33, %34 : vector<8x32xf32>
    %c0_30 = arith.constant 0 : index
    %c0_31 = arith.constant 0 : index
    %36 = vector.load %arg11[%c0_30, %c0_31] : memref<32x128xf32, #tpu.memory_space<vmem>>, vector<32x128xf32>
    %cst_32 = arith.constant dense<0.000000e+00> : vector<8x128xf32>
    %37 = tpu.matmul %35, %36, %cst_32 {dimension_numbers = #tpu.dot_dimension_numbers<[1], [0], [0], [1], [0, 0, 1, 1], [], []>} : vector<8x32xf32>, vector<32x128xf32>, vector<8x128xf32> -> vector<8x128xf32>
    %c0_33 = arith.constant 0 : index
    %c0_34 = arith.constant 0 : index
    %38 = vector.load %arg12[%c0_33, %c0_34] : memref<1x128xf32, #tpu.memory_space<vmem>>, vector<1x128xf32>
    %39 = vector.broadcast %38 : vector<1x128xf32> to vector<8x128xf32>
    %40 = arith.addf %37, %39 : vector<8x128xf32>
    %c0_35 = arith.constant 0 : index
    %c0_36 = arith.constant 0 : index
    %41 = vector.load %arg13[%c0_35, %c0_36] : memref<8x128xf32, #tpu.memory_space<vmem>>, vector<8x128xf32>
    tpu.vector_store %arg13[%c0_35, %c0_36], %40 {strides = array<i32>} : memref<8x128xf32, #tpu.memory_space<vmem>>, vector<8x128xf32>,
    return
  }
}

</mosaic_0001>

<bundles_post_ra>
// kernel: multimodal_forward.1
= control target key start
LH: loop header
LB: loop body
LE: loop exit
PB: predicated region body
PF: predicated region fallthrough
CT: control target
= control target key end

     0   :  { %18 = vsyncpa [#allocation3], 0  ;;  %s506_s28 = smov [#allocation2]   ;;  %s507_s30 = smov 128   ;;  %s934_s0 = inlined_call_operand.vmem [shape: f32[8,128], index: 0, kind: input, shape index: {}]   ;;  %s935_s1 = inlined_call_operand.vmem [shape: f32[128,192], index: 1, kind: input, shape index: {}]   ;;  %s936_s2 = inlined_call_operand.vmem [shape: f32[1,192], index: 2, kind: input, shape index: {}]   ;;  %s937_s3 = inlined_call_operand.vmem [shape: f32[192,192], index: 3, kind: input, shape index: {}]   ;;  %s938_s4 = inlined_call_operand.vmem [shape: f32[1,192], index: 4, kind: input, shape index: {}]   ;;  %s939_s5 = inlined_call_operand.hbm [shape: f32[192,128], index: 5, kind: input, shape index: {}]   ;;  %s940_s6 = inlined_call_operand.vmem [shape: f32[1,128], index: 6, kind: input, shape index: {}]   ;;  %s941_s7 = inlined_call_operand.vmem [shape: f32[128,64], index: 7, kind: input, shape index: {}]   ;;  %s942_s8 = inlined_call_operand.vmem [shape: f32[1,64], index: 8, kind: input, shape index: {}]   ;;  %s943_s9 = inlined_call_operand.vmem [shape: f32[64,32], index: 9, kind: input, shape index: {}]   ;;  %s944_s10 = inlined_call_operand.vmem [shape: f32[1,32], index: 10, kind: input, shape index: {}]   ;;  %s945_s11 = inlined_call_operand.vmem [shape: f32[32,128], index: 11, kind: input, shape index: {}]   ;;  %s946_s12 = inlined_call_operand.vmem [shape: f32[1,128], index: 12, kind: input, shape index: {}]   ;;  %s947_s13 = inlined_call_operand.vmem [shape: f32[8,128], index: 13, kind: output, shape index: {}]  }
   0x1   :  { %s33_s27 = sshll.u32 %s939_s5, 4  ;;  %s35_s29 = sshll.u32 %s506_s28, 4  ;;  %s34_s27 = int_to_ptr.hbm [resolvable:$true] %s33_s27  ;;  %s36_s29 = int_to_ptr.vmem [resolvable:$true] %s35_s29 }
   0x2   :  { %s508_s14 = smov 8  }
   0x3   :  { %41 = dma.hbm_to_vmem [thread:$0]  %s34_s27, 3072, %s36_s29, [#allocation3], %s507_s30, %s507_s30, %s508_s14  }
   0x4   :  { %504 = dma.done.wait [#allocation3], 3072  }
   0x5   :  { %505 = vsyncadd [#allocation3], 4294964224  ;;  %v91_v0 = vld [vmem:[%s935_s1 + $0xf0] sm:$0xff]  ;;  %v92_v1 = vld [vmem:[%s935_s1 + $0xf8] sm:$0xff]  ;;  %vm195_vm0 = vcmask 523264   ;;  %vm438_vm1 = vcmask 261120  }
   0x6   :  { %v89_v2 = vld [vmem:[%s935_s1 + $0xe0] sm:$0xff]  ;;  %99 = vmatpush.msra.mxu0 %v91_v0  ;;  %119 = vmatpush.msra.mxu1 %v92_v1  ;;  %v90_v3 = vld [vmem:[%s935_s1 + $0xe8] sm:$0xff]  ;;  %v87_v4 = vld [vmem:[%s935_s1 + $0xd0] sm:$0xff] }
   0x7   :  { %v88_v5 = vld [vmem:[%s935_s1 + $0xd8] sm:$0xff]  ;;  %v85_v6 = vld [vmem:[%s935_s1 + $0xc0] sm:$0xff]  ;;  %v86_v7 = vld [vmem:[%s935_s1 + $0xc8] sm:$0xff] }
   0x8   :  { %100 = vmatpush.msra.mxu0 %v89_v2  ;;  %120 = vmatpush.msra.mxu1 %v90_v3  ;;  %v83_v8 = vld [vmem:[%s935_s1 + $0xb0] sm:$0xff]  ;;  %v84_v9 = vld [vmem:[%s935_s1 + $0xb8] sm:$0xff]  ;;  %v81_v10 = vld [vmem:[%s935_s1 + $0xa0] sm:$0xff] }
   0x9   :  { %v82_v11 = vld [vmem:[%s935_s1 + $0xa8] sm:$0xff]  ;;  %v79_v12 = vld [vmem:[%s935_s1 + $0x90] sm:$0xff]  ;;  %v80_v13 = vld [vmem:[%s935_s1 + $0x98] sm:$0xff] }
   0xa   :  { %101 = vmatpush.msra.mxu0 %v87_v4  ;;  %121 = vmatpush.msra.mxu1 %v88_v5  ;;  %v187_v14 = vld [vmem:[%s937_s3 + $0x170] sm:$0xff]  ;;  %v185_v15 = vld [vmem:[%s937_s3 + $0x160] sm:$0xff]  ;;  %v78_v17 = vld [vmem:[%s935_s1 + $0x88] sm:$0xff] }
   0xb   :  { %v77_v16 = vld [vmem:[%s935_s1 + $0x80] sm:$0xff]  ;;  %227 = vmatpush.msra.mxu3 %v187_v14  ;;  %v183_v18 = vld [vmem:[%s937_s3 + $0x150] sm:$0xff]  ;;  %v76_v21 = vld [vmem:[%s935_s1 + $0x78] sm:$0xff] }
   0xc   :  { %102 = vmatpush.msra.mxu0 %v85_v6  ;;  %122 = vmatpush.msra.mxu1 %v86_v7  ;;  %v171_v19 = vld [vmem:[%s937_s3 + $0xf0] sm:$0xff]  ;;  %v169_v22 = vld [vmem:[%s937_s3 + $0xe0] sm:$0xff]  ;;  %v74_v26 = vld [vmem:[%s935_s1 + $0x68] sm:$0xff] }
   0xd   :  { %v75_v20 = vld [vmem:[%s935_s1 + $0x70] sm:$0xff]  ;;  %228 = vmatpush.msra.mxu3 %v185_v15  ;;  %199 = vmatpush.msra.mxu2 %v171_v19  ;;  %v181_v23 = vld [vmem:[%s937_s3 + $0x140] sm:$0xff]  ;;  %v72_v30 = vld [vmem:[%s935_s1 + $0x58] sm:$0xff] }
   0xe   :  { %103 = vmatpush.msra.mxu0 %v83_v8  ;;  %123 = vmatpush.msra.mxu1 %v84_v9  ;;  %v167_v24 = vld [vmem:[%s937_s3 + $0xd0] sm:$0xff]  ;;  %v73_v25 = vld [vmem:[%s935_s1 + $0x60] sm:$0xff]  ;;  %v70_v34 = vld [vmem:[%s935_s1 + $0x48] sm:$0xff] }
   0xf   :  { %229 = vmatpush.msra.mxu3 %v183_v18  ;;  %200 = vmatpush.msra.mxu2 %v169_v22  ;;  %v179_v27 = vld [vmem:[%s937_s3 + $0x130] sm:$0xff]  ;;  %v165_v28 = vld [vmem:[%s937_s3 + $0xc0] sm:$0xff]  ;;  %v68_v38 = vld [vmem:[%s935_s1 + $0x38] sm:$0xff] }
  0x10   :  { %104 = vmatpush.msra.mxu0 %v81_v10  ;;  %124 = vmatpush.msra.mxu1 %v82_v11  ;;  %v71_v29 = vld [vmem:[%s935_s1 + $0x50] sm:$0xff]  ;;  %v177_v31 = vld [vmem:[%s937_s3 + $0x120] sm:$0xff]  ;;  %v66_v42 = vld [vmem:[%s935_s1 + $0x28] sm:$0xff] }
  0x11   :  { %230 = vmatpush.msra.mxu3 %v181_v23  ;;  %201 = vmatpush.msra.mxu2 %v167_v24  ;;  %v163_v32 = vld [vmem:[%s937_s3 + $0xb0] sm:$0xff]  ;;  %v69_v33 = vld [vmem:[%s935_s1 + $0x40] sm:$0xff]  ;;  %v172_v43 = vld [vmem:[%s937_s3 + $0xf8] sm:$0xff] }
  0x12   :  { %105 = vmatpush.msra.mxu0 %v79_v12  ;;  %125 = vmatpush.msra.mxu1 %v80_v13  ;;  %v67_v35 = vld [vmem:[%s935_s1 + $0x30] sm:$0xff]  ;;  %v161_v37 = vld [vmem:[%s937_s3 + $0xa0] sm:$0xff]  ;;  %v64_v46 = vld [vmem:[%s935_s1 + $0x18] sm:$0xff] }
  0x13   :  { %231 = vmatpush.msra.mxu3 %v179_v27  ;;  %202 = vmatpush.msra.mxu2 %v165_v28  ;;  %v175_v36 = vld [vmem:[%s937_s3 + $0x110] sm:$0xff]  ;;  %v173_v39 = vld [vmem:[%s937_s3 + $0x100] sm:$0xff]  ;;  %v170_v47 = vld [vmem:[%s937_s3 + $0xe8] sm:$0xff] }
  0x14   :  { %106 = vmatpush.msra.mxu0 %v77_v16  ;;  %126 = vmatpush.msra.mxu1 %v78_v17  ;;  %v159_v40 = vld [vmem:[%s937_s3 + $0x90] sm:$0xff]  ;;  %v65_v41 = vld [vmem:[%s935_s1 + $0x20] sm:$0xff]  ;;  %v62_v50 = vld [vmem:[%s935_s1 + $0x8] sm:$0xff] }
  0x15   :  { %232 = vmatpush.msra.mxu3 %v177_v31  ;;  %203 = vmatpush.msra.mxu2 %v163_v32  ;;  %v157_v44 = vld [vmem:[%s937_s3 + $0x80] sm:$0xff]  ;;  %v63_v45 = vld [vmem:[%s935_s1 + $0x10] sm:$0xff]  ;;  %v168_v52 = vld [vmem:[%s937_s3 + $0xd8] sm:$0xff] }
  0x16   :  { %107 = vmatpush.msra.mxu0 %v75_v20  ;;  %127 = vmatpush.msra.mxu1 %v76_v21  ;;  %v155_v48 = vld [vmem:[%s937_s3 + $0x70] sm:$0xff]  ;;  %v61_v49 = vld [vmem:[%s935_s1] sm:$0xff]  ;;  %v166_v54 = vld [vmem:[%s937_s3 + $0xc8] sm:$0xff] }
  0x17   :  { %233 = vmatpush.msra.mxu3 %v175_v36  ;;  %204 = vmatpush.msra.mxu2 %v161_v37  ;;  %v60_v51 = vld [vmem:[%s934_s0] sm:$0xff]  ;;  %v151_v55 = vld [vmem:[%s937_s3 + $0x50] sm:$0xff]  ;;  %v164_v56 = vld [vmem:[%s937_s3 + $0xb8] sm:$0xff] }
  0x18   :  { %108 = vmatpush.msra.mxu0 %v73_v25  ;;  %128 = vmatpush.msra.mxu1 %v74_v26  ;;  %v153_v53 = vld [vmem:[%s937_s3 + $0x60] sm:$0xff]  ;;  %v162_v58 = vld [vmem:[%s937_s3 + $0xa8] sm:$0xff]  ;;  %v147_v59 = vld [vmem:[%s937_s3 + $0x30] sm:$0xff] }
  0x19   :  { %234 = vmatpush.msra.mxu3 %v173_v39  ;;  %205 = vmatpush.msra.mxu2 %v159_v40  ;;  %v149_v57 = vld [vmem:[%s937_s3 + $0x40] sm:$0xff]  ;;  %v160_v60 = vld [vmem:[%s937_s3 + $0x98] sm:$0xff]  ;;  %v158_v61 = vld [vmem:[%s937_s3 + $0x88] sm:$0xff] }
  0x1a   :  { %109 = vmatpush.msra.mxu0 %v71_v29  ;;  %129 = vmatpush.msra.mxu1 %v72_v30  ;;  %v156_v62 = vld [vmem:[%s937_s3 + $0x78] sm:$0xff]  ;;  %v154_v63 = vld [vmem:[%s937_s3 + $0x68] sm:$0xff]  ;;  %v145_v3 = vld [vmem:[%s937_s3 + $0x20] sm:$0xff] }
  0x1b   :  { %239 = vmatpush.msrb.mxu3 %v172_v43  ;;  %206 = vmatpush.msra.mxu2 %v157_v44  ;;  %v152_v0 = vld [vmem:[%s937_s3 + $0x58] sm:$0xff]  ;;  %v150_v1 = vld [vmem:[%s937_s3 + $0x48] sm:$0xff]  ;;  %v143_v5 = vld [vmem:[%s937_s3 + $0x10] sm:$0xff] }
  0x1c   :  { %110 = vmatpush.msra.mxu0 %v69_v33  ;;  %130 = vmatpush.msra.mxu1 %v70_v34  ;;  %v148_v2 = vld [vmem:[%s937_s3 + $0x38] sm:$0xff]  ;;  %v146_v4 = vld [vmem:[%s937_s3 + $0x28] sm:$0xff]  ;;  %v141_v7 = vld [vmem:[%s937_s3] sm:$0xff] }
  0x1d   :  { %240 = vmatpush.msrb.mxu3 %v170_v47  ;;  %207 = vmatpush.msra.mxu2 %v155_v48  ;;  %v144_v6 = vld [vmem:[%s937_s3 + $0x18] sm:$0xff]  ;;  %v142_v8 = vld [vmem:[%s937_s3 + $0x8] sm:$0xff]  ;;  %v295_v10 = vld [vmem:[#allocation2 + $0x70] sm:$0xff] }
  0x1e   :  { %111 = vmatpush.msra.mxu0 %v67_v35  ;;  %131 = vmatpush.msra.mxu1 %v68_v38  ;;  %v296_v9 = vld [vmem:[#allocation2 + $0x78] sm:$0xff]  ;;  %v294_v11 = vld [vmem:[#allocation2 + $0x68] sm:$0xff]  ;;  %v293_v12 = vld [vmem:[#allocation2 + $0x60] sm:$0xff] }
  0x1f   :  { %241 = vmatpush.msrb.mxu3 %v168_v52  ;;  %208 = vmatpush.msra.mxu2 %v153_v53  ;;  %v93_v13 = vld [vmem:[%s936_s2] sm:$0x3]  ;;  %v292_v14 = vld [vmem:[#allocation2 + $0x58] sm:$0xff]  ;;  %v291_v17 = vld [vmem:[#allocation2 + $0x50] sm:$0xff] }
  0x20   :  { %112 = vmatpush.msra.mxu0 %v65_v41  ;;  %132 = vmatpush.msra.mxu1 %v66_v42  ;;  %v95_v15 = vperm.slane %v93_v13, 0  ;;  %v96_v16 = vperm.slane %v93_v13, 1  ;;  %v290_v18 = vld [vmem:[#allocation2 + $0x48] sm:$0xff]  ;;  %v289_v23 = vld [vmem:[#allocation2 + $0x40] sm:$0xff]  ;;  %v188_v26 = vld [vmem:[%s937_s3 + $0x178] sm:$0xff] }
  0x21   :  { %242 = vmatpush.msrb.mxu3 %v166_v54  ;;  %209 = vmatpush.msra.mxu2 %v151_v55  ;;  %v288_v27 = vld [vmem:[#allocation2 + $0x38] sm:$0xff]  ;;  %v186_v28 = vld [vmem:[%s937_s3 + $0x168] sm:$0xff]  ;;  %v287_v29 = vld [vmem:[#allocation2 + $0x30] sm:$0xff] }
  0x22   :  { %113 = vmatpush.msra.mxu0 %v63_v45  ;;  %133 = vmatpush.msra.mxu1 %v64_v46  ;;  %v184_v30 = vld [vmem:[%s937_s3 + $0x158] sm:$0xff]  ;;  %v286_v31 = vld [vmem:[#allocation2 + $0x28] sm:$0xff]  ;;  %v285_v33 = vld [vmem:[#allocation2 + $0x20] sm:$0xff] }
  0x23   :  { %243 = vmatpush.msrb.mxu3 %v164_v56  ;;  %210 = vmatpush.msra.mxu2 %v149_v57  ;;  %v182_v32 = vld [vmem:[%s937_s3 + $0x148] sm:$0xff]  ;;  %v180_v34 = vld [vmem:[%s937_s3 + $0x138] sm:$0xff]  ;;  %v283_v39 = vld [vmem:[#allocation2 + $0x10] sm:$0xff] }
  0x24   :  { %114 = vmatpush.msra.mxu0 %v61_v49  ;;  %134 = vmatpush.msra.mxu1 %v62_v50  ;;  %v178_v35 = vld [vmem:[%s937_s3 + $0x128] sm:$0xff]  ;;  %v176_v36 = vld [vmem:[%s937_s3 + $0x118] sm:$0xff]  ;;  %v281_v41 = vld [vmem:[#allocation2] sm:$0xff] }
  0x25   :  { %115 = vmatmul.f32.vlgmr.msra.gmra.mxu0 %v60_v51  ;;  %135 = vmatmul.f32.vlgmr.msra.gmra.mxu1 %v60_v51  ;;  %v174_v37 = vld [vmem:[%s937_s3 + $0x108] sm:$0xff]  ;;  %v284_v38 = vld [vmem:[#allocation2 + $0x18] sm:$0xff]  ;;  %v303_v43 = vld [vmem:[#allocation2 + $0xb0] sm:$0xff] }
  0x26   :  { %244 = vmatpush.msrb.mxu3 %v162_v58  ;;  %211 = vmatpush.msra.mxu2 %v147_v59  ;;  %v282_v40 = vld [vmem:[#allocation2 + $0x8] sm:$0xff]  ;;  %v304_v42 = vld [vmem:[#allocation2 + $0xb8] sm:$0xff]  ;;  %v301_v45 = vld [vmem:[#allocation2 + $0xa0] sm:$0xff] }
  0x27   :  { %312 = vmatpush.msrb.mxu1 %v296_v9  ;;  %v302_v44 = vld [vmem:[#allocation2 + $0xa8] sm:$0xff]  ;;  %v300_v46 = vld [vmem:[#allocation2 + $0x98] sm:$0xff]  ;;  %v299_v47 = vld [vmem:[#allocation2 + $0x90] sm:$0xff] }
  0x28   :  { %245 = vmatpush.msrb.mxu3 %v160_v60  ;;  %212 = vmatpush.msra.mxu2 %v145_v3  ;;  %v298_v48 = vld [vmem:[#allocation2 + $0x88] sm:$0xff]  ;;  %v297_v49 = vld [vmem:[#allocation2 + $0x80] sm:$0xff]  ;;  %v368_v50 = vld [vmem:[%s941_s7 + $0x78] sm:$0xff] }
  0x29   :  { %313 = vmatpush.msrb.mxu1 %v295_v10  ;;  %v367_v51 = vld [vmem:[%s941_s7 + $0x70] sm:$0xff]  ;;  %373 = vmatpush.msrb.mxu0 %v368_v50  ;;  %v366_v52 = vld [vmem:[%s941_s7 + $0x68] sm:$0xff]  ;;  %v189_v53 = vld [vmem:[%s938_s4] sm:$0x3] }
  0x2a   :  { %246 = vmatpush.msrb.mxu3 %v158_v61  ;;  %213 = vmatpush.msra.mxu2 %v143_v5  ;;  %v191_v54 = vperm.slane %v189_v53, 0  ;;  %v192_v61 = vperm.slane %v189_v53, 1  ;;  %v364_v3 = vld [vmem:[%s941_s7 + $0x58] sm:$0xff]  ;;  %v362_v5 = vld [vmem:[%s941_s7 + $0x48] sm:$0xff]  ;;  %v357_v10 = vld [vmem:[%s941_s7 + $0x20] sm:$0xff] }
  0x2b   :  { %314 = vmatpush.msrb.mxu1 %v294_v11  ;;  %374 = vmatpush.msrb.mxu0 %v367_v51  ;;  %v358_v9 = vld [vmem:[%s941_s7 + $0x28] sm:$0xff]  ;;  %v356_v11 = vld [vmem:[%s941_s7 + $0x18] sm:$0xff] }
  0x2c   :  { %247 = vmatpush.msrb.mxu3 %v156_v62  ;;  %214 = vmatpush.msra.mxu2 %v141_v7  ;;  %v360_v7 = vld [vmem:[%s941_s7 + $0x38] sm:$0xff]  ;;  %v354_v13 = vld [vmem:[%s941_s7 + $0x8] sm:$0xff] }
  0x2d   :  { %315 = vmatpush.msrb.mxu1 %v293_v12  ;;  %375 = vmatpush.msrb.mxu0 %v366_v52  ;;  %v355_v12 = vld [vmem:[%s941_s7 + $0x10] sm:$0xff] }
  0x2e   :  { %248 = vmatpush.msrb.mxu3 %v154_v63  ;;  %340 = vmatpush.msrb.mxu2 %v304_v42 }
  0x2f   :  { %316 = vmatpush.msrb.mxu1 %v292_v14  ;;  %v353_v14 = vld [vmem:[%s941_s7] sm:$0xff] }
  0x30   :  { %249 = vmatpush.msrb.mxu3 %v152_v0  ;;  %341 = vmatpush.msrb.mxu2 %v303_v43 }
  0x31   :  { %317 = vmatpush.msrb.mxu1 %v291_v17  ;;  %v399_v17 = vld [vmem:[%s943_s9 + $0x28] sm:$0xff] }
  0x32   :  { %250 = vmatpush.msrb.mxu3 %v150_v1  ;;  %342 = vmatpush.msrb.mxu2 %v302_v44 }
  0x33   :  { %318 = vmatpush.msrb.mxu1 %v290_v18  ;;  %v398_v18 = vld [vmem:[%s943_s9 + $0x20] sm:$0xff] }
  0x34   :  { %251 = vmatpush.msrb.mxu3 %v148_v2  ;;  %343 = vmatpush.msrb.mxu2 %v301_v45  ;;  %v365_v2 = vld [vmem:[%s941_s7 + $0x60] sm:$0xff] }
  0x35   :  { %319 = vmatpush.msrb.mxu1 %v289_v23  ;;  %376 = vmatpush.msrb.mxu0 %v365_v2 }
  0x36   :  { %252 = vmatpush.msrb.mxu3 %v146_v4  ;;  %344 = vmatpush.msrb.mxu2 %v300_v46  ;;  %v363_v4 = vld [vmem:[%s941_s7 + $0x50] sm:$0xff] }
  0x37   :  { %320 = vmatpush.msrb.mxu1 %v288_v27  ;;  %377 = vmatpush.msrb.mxu0 %v364_v3  ;;  %v395_v27 = vld [vmem:[%s943_s9 + $0x8] sm:$0xff] }
  0x38   :  { %253 = vmatpush.msrb.mxu3 %v144_v6  ;;  %345 = vmatpush.msrb.mxu2 %v299_v47  ;;  %v361_v6 = vld [vmem:[%s941_s7 + $0x40] sm:$0xff] }
  0x39   :  { %321 = vmatpush.msrb.mxu1 %v287_v29  ;;  %378 = vmatpush.msrb.mxu0 %v363_v4  ;;  %v433_v29 = vld [vmem:[%s945_s11 + $0x18] sm:$0xff] }
  0x3a   :  { %254 = vmatpush.msrb.mxu3 %v142_v8  ;;  %346 = vmatpush.msrb.mxu2 %v298_v48  ;;  %v359_v8 = vld [vmem:[%s941_s7 + $0x30] sm:$0xff] }
  0x3b   :  { %322 = vmatpush.msrb.mxu1 %v286_v31  ;;  %379 = vmatpush.msrb.mxu0 %v362_v5  ;;  %v477_v31 = vld [vmem:[%s942_s8] ss:$0 sm:$0xff] }
  0x3c   :  { %347 = vmatpush.msrb.mxu2 %v297_v49 }
  0x3d   :  { %323 = vmatpush.msrb.mxu1 %v285_v33  ;;  %380 = vmatpush.msrb.mxu0 %v361_v6 }
  0x3f   :  { %324 = vmatpush.msrb.mxu1 %v284_v38  ;;  %381 = vmatpush.msrb.mxu0 %v360_v7 }
  0x41   :  { %325 = vmatpush.msrb.mxu1 %v283_v39  ;;  %382 = vmatpush.msrb.mxu0 %v359_v8 }
  0x43   :  { %326 = vmatpush.msrb.mxu1 %v282_v40  ;;  %383 = vmatpush.msrb.mxu0 %v358_v9 }
  0x45   :  { %327 = vmatpush.msrb.mxu1 %v281_v41  ;;  %384 = vmatpush.msrb.mxu0 %v357_v10  ;;  %v479_v41 = vld [vmem:[%s946_s12] ss:$0 sm:$0xff] }
  0x47   :  { %385 = vmatpush.msrb.mxu0 %v356_v11 }
  0x49   :  { %386 = vmatpush.msrb.mxu0 %v355_v12 }
  0x4b   :  { %387 = vmatpush.msrb.mxu0 %v354_v13 }
  0x4d   :  { %388 = vmatpush.msrb.mxu0 %v353_v14 }
  0xa2   :  { %v116_v19 = vpop.f32.mrf.mxu0  ;;  %v136_v20 = vpop.f32.mrf.mxu1 }
  0xa3   :  { %v117_v21 = vadd.f32 %v116_v19, %v95_v15  ;;  %v137_v22 = vadd.f32 %v136_v20, %v96_v16  ;;  %v401_v15 = vld [vmem:[%s943_s9 + $0x38] sm:$0xff]  ;;  %v400_v16 = vld [vmem:[%s943_s9 + $0x30] sm:$0xff]  ;;  %v476_v20 = vld [vmem:[%s940_s6] ss:$0 sm:$0xff] }
  0xa4   :  { %v397_v19 = vld [vmem:[%s943_s9 + $0x18] sm:$0xff] }
  0xa5   :  { %v139_v24 = vmax.f32 %v117_v21, 0.0  ;;  %v140_v25 = vmax.f32 %v137_v22, 0.0 }
  0xa7   :  { %215 = vmatmul.f32.vlgmr.msra.gmra.mxu2 %v139_v24  ;;  %468 = vmatmul.msk.f32.vlgmr.msra.gmra.mxu3 %vm195_vm0, %v140_v25 }
  0xa8   :  { %267 = vmatpush.msra.mxu3 %v188_v26  ;;  %417 = vmatpush.msra.mxu2 %v401_v15  ;;  %v396_v26 = vld [vmem:[%s943_s9 + $0x10] sm:$0xff] }
  0xaa   :  { %268 = vmatpush.msra.mxu3 %v186_v28  ;;  %418 = vmatpush.msra.mxu2 %v400_v16  ;;  %v394_v28 = vld [vmem:[%s943_s9] sm:$0xff] }
  0xac   :  { %269 = vmatpush.msra.mxu3 %v184_v30  ;;  %419 = vmatpush.msra.mxu2 %v399_v17  ;;  %v432_v30 = vld [vmem:[%s945_s11 + $0x10] sm:$0xff] }
  0xae   :  { %270 = vmatpush.msra.mxu3 %v182_v32  ;;  %420 = vmatpush.msra.mxu2 %v398_v18 }
  0xaf   :  { %255 = vmatmul.f32.vlgmr.msrb.gmra.mxu3 %v139_v24 }
  0xb0   :  { %271 = vmatpush.msra.mxu3 %v180_v34  ;;  %421 = vmatpush.msra.mxu2 %v397_v19 }
  0xb2   :  { %272 = vmatpush.msra.mxu3 %v178_v35  ;;  %422 = vmatpush.msra.mxu2 %v396_v26  ;;  %v431_v35 = vld [vmem:[%s945_s11 + $0x8] sm:$0xff] }
  0xb4   :  { %273 = vmatpush.msra.mxu3 %v176_v36  ;;  %423 = vmatpush.msra.mxu2 %v395_v27  ;;  %v430_v36 = vld [vmem:[%s945_s11] sm:$0xff] }
  0xb6   :  { %274 = vmatpush.msra.mxu3 %v174_v37  ;;  %424 = vmatpush.msra.mxu2 %v394_v28  ;;  %v478_v37 = vld [vmem:[%s944_s10] ss:$0 sm:$0xff] }
  0xb7   :  { %469 = vmatmul.msk.f32.vlgmr.msra.gmra.mxu3 %vm195_vm0, %v140_v25 }
  0xb8   :  { %454 = vmatpush.msrb.mxu3 %v433_v29 }
  0xba   :  { %455 = vmatpush.msrb.mxu3 %v432_v30 }
  0xbc   :  { %456 = vmatpush.msrb.mxu3 %v431_v35 }
  0xbe   :  { %457 = vmatpush.msrb.mxu3 %v430_v36 }
 0x12a   :  { %v216_v55 = vpop.f32.mrf.mxu2  ;;  %v236_v56 = vpop.f32.mrf.mxu3 }
 0x12b   :  { %v217_v57 = vadd.f32 %v216_v55, %v191_v54 }
 0x12d   :  { %v237_v58 = vadd.f32 %v236_v56, %v217_v57 }
 0x12f   :  { %v279_v59 = vmax.f32 %v237_v58, 0.0 }
 0x131   :  { %328 = vmatmul.f32.vlgmr.msrb.gmra.mxu1 %v279_v59 }
 0x132   :  { %v256_v60 = vpop.f32.mrf.mxu3 }
 0x133   :  { %v257_v62 = vadd.f32 %v256_v60, %v192_v61 }
 0x13a   :  { %v276_v63 = vpop.f32.mrf.mxu3 }
 0x13b   :  { %v277_v0 = vadd.f32 %v276_v63, %v257_v62 }
 0x13d   :  { %v280_v1 = vmax.f32 %v277_v0, 0.0 }
 0x13f   :  { %470 = vmatmul.msk.f32.vlgmr.msrb.gmra.mxu2 %vm195_vm0, %v280_v1 }
 0x1ae   :  { %v329_v21 = vpop.f32.mrf.mxu1 }
 0x1af   :  { %v330_v22 = vadd.f32 %v476_v20, %v329_v21 }
 0x1c2   :  { %v349_v23 = vpop.f32.mrf.mxu2 }
 0x1c3   :  { %v350_v24 = vadd.f32 %v349_v23, %v330_v22 }
 0x1c5   :  { %v352_v25 = vmax.f32 %v350_v24, 0.0 }
 0x1c7   :  { %389 = vmatmul.f32.vlgmr.msrb.gmra.mxu0 %v352_v25 }
 0x244   :  { %v390_v32 = vpop.f32.mrf.mxu0 }
 0x245   :  { %v391_v33 = vadd.f32 %v477_v31, %v390_v32 }
 0x247   :  { %v393_v34 = vmax.f32 %v391_v33, 0.0 }
 0x249   :  { %471 = vmatmul.msk.f32.vlgmr.msra.gmra.mxu2 %vm195_vm0, %v393_v34 }
 0x2cc   :  { %v426_v38 = vpop.f32.mrf.mxu2 }
 0x2cd   :  { %v427_v39 = vadd.f32 %v478_v37, %v426_v38 }
 0x2cf   :  { %v429_v40 = vmax.f32 %v427_v39, 0.0 }
 0x2d1   :  { %472 = vmatmul.msk.f32.vlgmr.msrb.gmra.mxu3 %vm438_vm1, %v429_v40 }
 0x354   :  { %v459_v42 = vpop.f32.mrf.mxu3 }
 0x355   :  { %v460_v43 = vadd.f32 %v479_v41, %v459_v42 }
 0x357   :  { %462 = vst [vmem:[%s947_s13] sm:$0xff] %v460_v43 }
 0x358   :  { %467 = vsyncpa [#allocation3], 1 }

</bundles_post_ra>
